<compile_context>
chip_gen: v6e
topology: v6e:2x2x1
jax: 0.10.0
libtpu: 0.0.40
codegen_flags: <defaults>
</compile_context>

<pallas_src>
import functools

import jax
import jax.numpy as jnp
from jax.experimental import pallas as pl
from jax.experimental.pallas import tpu as pltpu


def _round_up(n, m):
    return ((n + m - 1) // m) * m


def _pad_2d(a, rows, cols):
    out = jnp.zeros((rows, cols), jnp.float32)
    return out.at[: a.shape[0], : a.shape[1]].set(a.astype(jnp.float32))


# ----------------------------------------------------------------------------
# The single fused Pallas kernel
# ----------------------------------------------------------------------------
def _recipe_vae_kernel(*refs, z_pad, use_mean):
    f32 = jnp.float32
    bf16 = jnp.bfloat16
    if use_mean:
        (x_ref,
         w0, b0, w1, b1, wh, bh,
         wd0, bd0, wd1, bd1, wd2, bd2, wtf, btf,
         ml_ref, xhat_ref, logits_ref) = refs
        eps_ref = None
    else:
        (x_ref, eps_ref,
         w0, b0, w1, b1, wh, bh,
         wd0, bd0, wd1, bd1, wd2, bd2, wtf, btf,
         ml_ref, xhat_ref, logits_ref) = refs

    x = x_ref[...]                                                     # bf16 stream
    # encoder MLP (bf16 MXU operands, f32 accumulation / bias / ReLU)
    h = jnp.maximum(jnp.dot(x, w0[...], preferred_element_type=f32) + b0[...], 0.0)
    h = jnp.maximum(jnp.dot(h.astype(bf16), w1[...], preferred_element_type=f32)
                    + b1[...], 0.0)
    # fused mean || logvar head: one MXU pass, split at a 128-lane boundary
    ml = jnp.dot(h.astype(bf16), wh[...], preferred_element_type=f32) + bh[...]
    ml_ref[...] = ml
    mean = ml[:, :z_pad]
    logvar = ml[:, z_pad:]
    # reparameterization (exp lands on the EUP slot, mul/add on the VPU; f32)
    if use_mean:
        z = mean
    else:
        z = eps_ref[...] * jnp.exp(0.5 * logvar) + mean
    # decoder MLP
    d = jnp.maximum(jnp.dot(z.astype(bf16), wd0[...], preferred_element_type=f32)
                    + bd0[...], 0.0)
    d = jnp.maximum(jnp.dot(d.astype(bf16), wd1[...], preferred_element_type=f32)
                    + bd1[...], 0.0)
    db = d.astype(bf16)
    x_hat = jnp.dot(db, wd2[...], preferred_element_type=f32) + bd2[...]
    xhat_ref[...] = x_hat.astype(xhat_ref.dtype)
    # all five per-slot type decoders, with dec2 folded in offline -> read `d` directly
    logits = jnp.dot(db, wtf[...], preferred_element_type=f32) + btf[...]
    logits_ref[...] = logits.astype(logits_ref.dtype)


def fused_recipe_vae(fused, x, eps, *, use_mean=False, batch_tile=1024):
    """Run encoder / reparam / decoder / type-decoders in one pallas_call."""
    B = x.shape[0]
    IN_P, Z_P, TYPE_P = fused["IN_P"], fused["Z_P"], fused["TYPE_P"]

    B_pad = _round_up(B, 8)                      # pad to the f32 sublane only
    TB = min(batch_tile, B_pad)
    if B_pad > 8:
        # keep >=2 batch tiles so v7x megacore ("parallel") actually splits work
        TB = min(TB, _round_up(pl.cdiv(B_pad, 2), 8))
    TB = max(8, (TB // 8) * 8)
    grid = (pl.cdiv(B_pad, TB),)                 # ragged last tile handled by Pallas

    xp = jnp.zeros((B_pad, IN_P), jnp.bfloat16).at[:B, : x.shape[1]].set(
        x.astype(jnp.bfloat16))
    inputs = [xp]
    in_specs = [pl.BlockSpec((TB, IN_P), lambda i: (i, 0))]
    if not use_mean:
        ep = jnp.zeros((B_pad, Z_P), jnp.float32).at[:B, : eps.shape[1]].set(
            eps.astype(jnp.float32))
        inputs.append(ep)
        in_specs.append(pl.BlockSpec((TB, Z_P), lambda i: (i, 0)))

    weight_names = ["w_enc0", "b_enc0", "w_enc1", "b_enc1", "w_head", "b_head",
                    "w_dec0", "b_dec0", "w_dec1", "b_dec1", "w_dec2", "b_dec2",
                    "w_types_fused", "b_types_fused"]
    weights = [fused[n] for n in weight_names]
    # weights stay VMEM-resident across batch tiles (block index constant)
    in_specs += [pl.BlockSpec(w.shape, lambda i: (0, 0)) for w in weights]
    inputs += weights

    kern = functools.partial(_recipe_vae_kernel, z_pad=Z_P, use_mean=use_mean)

    ml_p, xhat_p, logits_p = pl.pallas_call(
        kern,
        out_shape=(
            jax.ShapeDtypeStruct((B_pad, 2 * Z_P), jnp.float32),    # mean || logvar
            jax.ShapeDtypeStruct((B_pad, IN_P), jnp.bfloat16),      # x_hat
            jax.ShapeDtypeStruct((B_pad, TYPE_P), jnp.bfloat16),    # type logits
        ),
        grid=grid,
        in_specs=in_specs,
        out_specs=(
            pl.BlockSpec((TB, 2 * Z_P), lambda i: (i, 0)),
            pl.BlockSpec((TB, IN_P), lambda i: (i, 0)),
            pl.BlockSpec((TB, TYPE_P), lambda i: (i, 0)),
        ),
        compiler_params=pltpu.CompilerParams(
            dimension_semantics=("parallel",),
            vmem_limit_bytes=48 * 1024 * 1024),
    )(*inputs)

    zs, ni, nt = fused["z_size"], fused["num_inputs"], fused["num_type_cols"]
    mean = ml_p[:B, :zs]
    logvar = ml_p[:B, Z_P: Z_P + zs]
    if use_mean:
        z = mean
    else:
        z = eps.astype(jnp.float32)[:, :zs] * jnp.exp(0.5 * logvar) + mean
    x_hat = xhat_p[:B, :ni].astype(jnp.float32)
    logits = logits_p[:B, :nt].astype(jnp.float32)
    return mean, logvar, z, x_hat, logits


# ----------------------------------------------------------------------------
# Args (synthetic, small)
# ----------------------------------------------------------------------------
class Args:
    # type vocabularies / embeddings
    num_grain_types = 16
    grain_type_embed_size = 8
    num_adjunct_types = 12
    adjunct_type_embed_size = 8
    num_hop_types = 20
    hop_type_embed_size = 8
    num_misc_types = 10
    misc_type_embed_size = 8
    num_microorganism_types = 8
    microorganism_type_embed_size = 8
    # slots / steps / stages
    num_mash_steps = 3
    num_mash_step_types = 4
    num_ferment_stages = 2
    num_grain_slots = 4
    num_adjunct_slots = 3
    num_hop_slots = 4
    num_hop_stage_types = 4
    num_misc_slots = 3
    num_misc_stage_types = 4
    num_microorganism_slots = 2
    num_mo_stage_types = 3
    # VAE
    hidden_layers = [64, 32]
    z_size = 16
    gain = 1.0
    use_batch_norm = False
    use_layer_norm = False  # TODO(synk): layer/batch norm paths not exercised (disabled in args)

    # derived group sizes (match RecipeNetFootDecoder.split_sizes)
    num_toplvl_inputs = 3
    num_mash_step_inputs = num_mash_steps * num_mash_step_types + 2 * num_mash_steps
    num_ferment_stage_inputs = 2 * num_ferment_stages
    num_grain_slot_inputs = num_grain_slots * grain_type_embed_size + num_grain_slots
    num_adjunct_slot_inputs = num_adjunct_slots * adjunct_type_embed_size + num_adjunct_slots
    num_hop_slot_inputs = (num_hop_slots * hop_type_embed_size
                           + num_hop_slots * num_hop_stage_types
                           + 2 * num_hop_slots)
    num_misc_slot_inputs = (num_misc_slots * misc_type_embed_size
                            + num_misc_slots * num_misc_stage_types
                            + 2 * num_misc_slots)
    num_microorganism_slot_inputs = (num_microorganism_slots * microorganism_type_embed_size
                                     + num_microorganism_slots * num_mo_stage_types)
    num_inputs = (num_toplvl_inputs + num_mash_step_inputs + num_ferment_stage_inputs
                  + num_grain_slot_inputs + num_adjunct_slot_inputs + num_hop_slot_inputs
                  + num_misc_slot_inputs + num_microorganism_slot_inputs)


# ----------------------------------------------------------------------------
# Parameter init (deterministic, xavier_normal like the PyTorch module)
# ----------------------------------------------------------------------------
def xavier_linear(key, in_f, out_f, gain, bias_const=0.0, use_bias=True):
    std = gain * (2.0 / (in_f + out_f)) ** 0.5
    w = jax.random.normal(key, (out_f, in_f), dtype=jnp.float32) * std  # torch layout (out, in)
    w_t = w.T                                                           # (in, out) for the kernel
    b = jnp.full((out_f,), bias_const, dtype=jnp.float32) if use_bias else jnp.zeros((out_f,), jnp.float32)
    return {"w_t": w_t, "b": b}


def init_params(args, key):
    keys = iter(jax.random.split(key, 32))
    p = {}
    # encoder MLP
    p["enc0"] = xavier_linear(next(keys), args.num_inputs, args.hidden_layers[0], args.gain)
    p["enc1"] = xavier_linear(next(keys), args.hidden_layers[0], args.hidden_layers[1], args.gain)
    p["mean"] = xavier_linear(next(keys), args.hidden_layers[1], args.z_size, args.gain, 0.0)
    p["logvar"] = xavier_linear(next(keys), args.hidden_layers[1], args.z_size, args.gain, -100.0)
    # decoder MLP
    p["dec0"] = xavier_linear(next(keys), args.z_size, args.hidden_layers[1], args.gain)
    p["dec1"] = xavier_linear(next(keys), args.hidden_layers[1], args.hidden_layers[0], args.gain)
    p["dec2"] = xavier_linear(next(keys), args.hidden_layers[0], args.num_inputs, args.gain)
    # foot decoder (bias=False type decoders)
    p["grain_dec"] = xavier_linear(next(keys), args.grain_type_embed_size, args.num_grain_types, args.gain, use_bias=False)
    p["adjunct_dec"] = xavier_linear(next(keys), args.adjunct_type_embed_size, args.num_adjunct_types, args.gain, use_bias=False)
    p["hop_dec"] = xavier_linear(next(keys), args.hop_type_embed_size, args.num_hop_types, args.gain, use_bias=False)
    p["misc_dec"] = xavier_linear(next(keys), args.misc_type_embed_size, args.num_misc_types, args.gain, use_bias=False)
    p["mo_dec"] = xavier_linear(next(keys), args.microorganism_type_embed_size, args.num_microorganism_types, args.gain, use_bias=False)
    # head encoder embeddings (nn.Embedding default ~ N(0,1))
    p["grain_emb"] = jax.random.normal(next(keys), (args.num_grain_types, args.grain_type_embed_size), jnp.float32)
    p["adjunct_emb"] = jax.random.normal(next(keys), (args.num_adjunct_types, args.adjunct_type_embed_size), jnp.float32)
    p["hop_emb"] = jax.random.normal(next(keys), (args.num_hop_types, args.hop_type_embed_size), jnp.float32)
    p["misc_emb"] = jax.random.normal(next(keys), (args.num_misc_types, args.misc_type_embed_size), jnp.float32)
    p["mo_emb"] = jax.random.normal(next(keys), (args.num_microorganism_types, args.microorganism_type_embed_size), jnp.float32)
    return p


def build_fused_params(params, args):
    """Pad / fuse / fold all weights ONCE into lane-dense, VMEM-resident arrays."""
    hp = jax.lax.Precision.HIGHEST
    IN_P = _round_up(args.num_inputs, 128)          # 208 -> 256
    H0_P = _round_up(args.hidden_layers[0], 128)    # 64  -> 128
    H1_P = _round_up(args.hidden_layers[1], 128)    # 32  -> 128
    Z_P = _round_up(args.z_size, 128)               # 16  -> 128

    def pad_w(p, rows, cols):
        return _pad_2d(p["w_t"], rows, cols)

    def pad_b(p, cols):
        return _pad_2d(p["b"].reshape(1, -1), 1, cols)

    # f32 padded weights (casting to bf16 happens at the end; biases stay f32)
    w_enc0, b_enc0 = pad_w(params["enc0"], IN_P, H0_P), pad_b(params["enc0"], H0_P)
    w_enc1, b_enc1 = pad_w(params["enc1"], H0_P, H1_P), pad_b(params["enc1"], H1_P)
    w_dec0, b_dec0 = pad_w(params["dec0"], Z_P, H1_P), pad_b(params["dec0"], H1_P)
    w_dec1, b_dec1 = pad_w(params["dec1"], H1_P, H0_P), pad_b(params["dec1"], H0_P)
    w_dec2, b_dec2 = pad_w(params["dec2"], H0_P, IN_P), pad_b(params["dec2"], IN_P)

    # fused mean || logvar projection head (one matmul; split at Z_P inside the kernel)
    w_head = jnp.zeros((H1_P, 2 * Z_P), jnp.float32)
    w_head = w_head.at[: args.hidden_layers[1], : args.z_size].set(params["mean"]["w_t"])
    w_head = w_head.at[: args.hidden_layers[1], Z_P: Z_P + args.z_size].set(params["logvar"]["w_t"])
    b_head = jnp.zeros((1, 2 * Z_P), jnp.float32)
    b_head = b_head.at[0, : args.z_size].set(params["mean"]["b"])
    b_head = b_head.at[0, Z_P: Z_P + args.z_size].set(params["logvar"]["b"])

    # the five bias-free per-slot type decoders collapsed into ONE block-diagonal matrix
    off = args.num_toplvl_inputs + args.num_mash_step_inputs + args.num_ferment_stage_inputs
    off_grain = off;   off += args.num_grain_slot_inputs
    off_adjunct = off; off += args.num_adjunct_slot_inputs
    off_hop = off;     off += args.num_hop_slot_inputs
    off_misc = off;    off += args.num_misc_slot_inputs
    off_mo = off
    raw = [
        ("grain",   off_grain,   args.num_grain_slots,         args.grain_type_embed_size,         args.num_grain_types),
        ("adjunct", off_adjunct, args.num_adjunct_slots,       args.adjunct_type_embed_size,       args.num_adjunct_types),
        ("hop",     off_hop,     args.num_hop_slots,           args.hop_type_embed_size,           args.num_hop_types),
        ("misc",    off_misc,    args.num_misc_slots,          args.misc_type_embed_size,          args.num_misc_types),
        ("mo",      off_mo,      args.num_microorganism_slots, args.microorganism_type_embed_size, args.num_microorganism_types),
    ]
    total_cols = sum(n * t for _, _, n, _, t in raw)
    TYPE_P = _round_up(total_cols, 128)              # 226 -> 256
    w_types = jnp.zeros((IN_P, TYPE_P), jnp.float32)
    groups = []
    col = 0
    for name, emb_off, n_slots, e, t in raw:
        w = params[f"{name}_dec"]["w_t"]             # (embed, types)
        for s in range(n_slots):
            w_types = w_types.at[emb_off + s * e: emb_off + (s + 1) * e,
                                 col + s * t: col + (s + 1) * t].set(w)
        groups.append((name, emb_off, n_slots, e, t, col))
        col += n_slots * t

    # fold dec2 into the type decoders: logits = d @ (wd2 @ w_types) + bd2 @ w_types
    w_types_fused = jnp.dot(w_dec2, w_types, precision=hp)     # (H0_P, TYPE_P)
    b_types_fused = jnp.dot(b_dec2, w_types, precision=hp)     # (1, TYPE_P)

    bf16 = jnp.bfloat16
    fused = {
        "IN_P": IN_P, "H0_P": H0_P, "H1_P": H1_P, "Z_P": Z_P, "TYPE_P": TYPE_P,
        "z_size": args.z_size, "num_inputs": args.num_inputs,
        "num_type_cols": total_cols, "type_groups": groups,
        # matmul operands in bf16 (MXU-native); biases stay f32 (added post-matmul)
        "w_enc0": w_enc0.astype(bf16), "b_enc0": b_enc0,
        "w_enc1": w_enc1.astype(bf16), "b_enc1": b_enc1,
        "w_head": w_head.astype(bf16), "b_head": b_head,
        "w_dec0": w_dec0.astype(bf16), "b_dec0": b_dec0,
        "w_dec1": w_dec1.astype(bf16), "b_dec1": b_dec1,
        "w_dec2": w_dec2.astype(bf16), "b_dec2": b_dec2,
        "w_types_fused": w_types_fused.astype(bf16), "b_types_fused": b_types_fused,
    }
    return fused


# ----------------------------------------------------------------------------
# Head encoder (glue: embedding lookups, one-hots, concatenation)
# ----------------------------------------------------------------------------
def head_encoder(params, args, x):
    heads = {}
    heads["x_toplvl"] = jnp.stack(
        [x["boil_time"], x["mash_ph"], x["sparge_temp"]], axis=1).astype(jnp.float32)

    B = heads["x_toplvl"].shape[0]
    heads["enc_mash_step_type_onehot"] = jax.nn.one_hot(
        x["mash_step_type_inds"], args.num_mash_step_types, dtype=jnp.float32).reshape(B, -1)
    heads["x_mash_steps"] = jnp.concatenate(
        [heads["enc_mash_step_type_onehot"], x["mash_step_times"], x["mash_step_avg_temps"]], axis=1)

    heads["x_ferment_stages"] = jnp.concatenate(
        [x["ferment_stage_times"], x["ferment_stage_temps"]], axis=1)

    heads["enc_grain_type_embed"] = params["grain_emb"][x["grain_core_type_inds"]].reshape(B, -1)
    heads["enc_grain_type_onehot"] = jax.nn.one_hot(x["grain_core_type_inds"], args.num_grain_types, dtype=jnp.float32)
    heads["x_grains"] = jnp.concatenate([heads["enc_grain_type_embed"], x["grain_amts"]], axis=1)

    heads["enc_adjunct_type_embed"] = params["adjunct_emb"][x["adjunct_core_type_inds"]].reshape(B, -1)
    heads["enc_adjunct_type_onehot"] = jax.nn.one_hot(x["adjunct_core_type_inds"], args.num_adjunct_types, dtype=jnp.float32)
    heads["x_adjuncts"] = jnp.concatenate([heads["enc_adjunct_type_embed"], x["adjunct_amts"]], axis=1)

    heads["enc_hop_type_embed"] = params["hop_emb"][x["hop_type_inds"]].reshape(B, -1)
    heads["enc_hop_type_onehot"] = jax.nn.one_hot(x["hop_type_inds"], args.num_hop_types, dtype=jnp.float32)
    heads["enc_hop_stage_type_onehot"] = jax.nn.one_hot(
        x["hop_stage_type_inds"], args.num_hop_stage_types, dtype=jnp.float32).reshape(B, -1)
    heads["x_hops"] = jnp.concatenate(
        [heads["enc_hop_type_embed"], heads["enc_hop_stage_type_onehot"],
         x["hop_times"], x["hop_concentrations"]], axis=1)

    heads["enc_misc_type_embed"] = params["misc_emb"][x["misc_type_inds"]].reshape(B, -1)
    heads["enc_misc_type_onehot"] = jax.nn.one_hot(x["misc_type_inds"], args.num_misc_types, dtype=jnp.float32)
    heads["enc_misc_stage_type_onehot"] = jax.nn.one_hot(
        x["misc_stage_inds"], args.num_misc_stage_types, dtype=jnp.float32).reshape(B, -1)
    heads["x_miscs"] = jnp.concatenate(
        [heads["enc_misc_type_embed"], heads["enc_misc_stage_type_onehot"],
         x["misc_times"], x["misc_amts"]], axis=1)

    heads["enc_mo_type_embed"] = params["mo_emb"][x["mo_type_inds"]].reshape(B, -1)
    heads["enc_mo_type_onehot"] = jax.nn.one_hot(x["mo_type_inds"], args.num_microorganism_types, dtype=jnp.float32)
    heads["enc_mo_stage_type_onehot"] = jax.nn.one_hot(
        x["mo_stage_inds"], args.num_mo_stage_types, dtype=jnp.float32).reshape(B, -1)
    heads["x_mos"] = jnp.concatenate([heads["enc_mo_type_embed"], heads["enc_mo_stage_type_onehot"]], axis=1)

    x_cat = jnp.concatenate(
        [heads["x_toplvl"], heads["x_mash_steps"], heads["x_ferment_stages"],
         heads["x_grains"], heads["x_adjuncts"], heads["x_hops"],
         heads["x_miscs"], heads["x_mos"]], axis=1)
    return x_cat, heads


# ----------------------------------------------------------------------------
# Foot decoder (pure JAX glue: splits + reshapes of kernel outputs)
# ----------------------------------------------------------------------------
def _split(x, sizes, axis=1):
    outs, off = [], 0
    for s in sizes:
        outs.append(jax.lax.slice_in_dim(x, off, off + s, axis=axis))
        off += s
    return outs


def foot_decoder(args, fused, x_hat, type_logits):
    foots = {}
    split_sizes = [args.num_toplvl_inputs, args.num_mash_step_inputs, args.num_ferment_stage_inputs,
                   args.num_grain_slot_inputs, args.num_adjunct_slot_inputs, args.num_hop_slot_inputs,
                   args.num_misc_slot_inputs, args.num_microorganism_slot_inputs]
    (foots["x_hat_toplvl"], foots["x_hat_mash_steps"], foots["x_hat_ferment_stages"],
     foots["x_hat_grains"], foots["x_hat_adjuncts"], foots["x_hat_hops"],
     foots["x_hat_miscs"], foots["x_hat_mos"]) = _split(x_hat, split_sizes)

    nms = args.num_mash_steps
    (foots["dec_mash_step_type_onehot"], foots["dec_mash_step_times"],
     foots["dec_mash_step_avg_temps"]) = _split(
        foots["x_hat_mash_steps"], [nms * args.num_mash_step_types, nms, nms])

    ngs, ges = args.num_grain_slots, args.grain_type_embed_size
    foots["dec_grain_type_embed"], foots["dec_grain_amts"] = _split(
        foots["x_hat_grains"], [ngs * ges, ngs])

    nas, aes = args.num_adjunct_slots, args.adjunct_type_embed_size
    _, foots["dec_adjunct_amts"] = _split(foots["x_hat_adjuncts"], [nas * aes, nas])

    nhs, hes = args.num_hop_slots, args.hop_type_embed_size
    (_, foots["dec_hop_stage_type_onehot"], foots["dec_hop_times"],
     foots["dec_hop_concentrations"]) = _split(
        foots["x_hat_hops"], [nhs * hes, nhs * args.num_hop_stage_types, nhs, nhs])

    nmis, mes = args.num_misc_slots, args.misc_type_embed_size
    (_, foots["dec_misc_stage_type_onehot"], foots["dec_misc_times"],
     foots["dec_misc_amts"]) = _split(
        foots["x_hat_miscs"], [nmis * mes, nmis * args.num_misc_stage_types, nmis, nmis])

    nmos, moes = args.num_microorganism_slots, args.microorganism_type_embed_size
    _, foots["dec_mo_stage_type_onehot"] = _split(
        foots["x_hat_mos"], [nmos * moes, nmos * args.num_mo_stage_types])

    # per-slot type logits -- all produced by the single folded matmul in the kernel
    B = x_hat.shape[0]
    for name, _emb_off, n_slots, _e, n_types, col in fused["type_groups"]:
        foots[f"dec_{name}_type_logits"] = type_logits[:, col: col + n_slots * n_types].reshape(B, n_slots, n_types)
    return foots


# ----------------------------------------------------------------------------
# Full forward pass
# ----------------------------------------------------------------------------
def recipe_net_forward(params, fused, args, inputs, eps, use_mean=False):
    x, heads = head_encoder(params, args, inputs)
    mean, logvar, z, x_hat, type_logits = fused_recipe_vae(fused, x, eps, use_mean=use_mean)
    foots = foot_decoder(args, fused, x_hat, type_logits)
    return heads, foots, mean, logvar, z


# ----------------------------------------------------------------------------
# Pure-JAX f32 reference (numerical sanity check of the fused bf16 kernel)
# ----------------------------------------------------------------------------
def reference_forward(params, fused, x, eps, use_mean=False):
    hp = jax.lax.Precision.HIGHEST

    def dense(v, p, act=None):
        y = jnp.dot(v, p["w_t"], precision=hp) + p["b"]
        return jnp.maximum(y, 0.0) if act == "relu" else y

    h = dense(x, params["enc0"], "relu")
    h = dense(h, params["enc1"], "relu")
    mean = dense(h, params["mean"])
    logvar = dense(h, params["logvar"])
    z = mean if use_mean else eps * jnp.exp(0.5 * logvar) + mean
    d = dense(z, params["dec0"], "relu")
    d = dense(d, params["dec1"], "relu")
    x_hat = dense(d, params["dec2"])
    B = x.shape[0]
    logits = {}
    for name, emb_off, n_slots, e, _t, _col in fused["type_groups"]:
        emb = x_hat[:, emb_off: emb_off + n_slots * e].reshape(B, n_slots, e)
        logits[name] = jnp.einsum("bse,et->bst", emb, params[f"{name}_dec"]["w_t"], precision=hp)
    return mean, logvar, z, x_hat, logits


def _check(name, a, b, atol=5e-2, rtol=5e-2):
    assert bool(jnp.allclose(a, b, atol=atol, rtol=rtol)), f"numerical mismatch in {name}"


# ----------------------------------------------------------------------------
# Main
# ----------------------------------------------------------------------------
if __name__ == "__main__":
    args = Args()
    B = 2
    key = jax.random.PRNGKey(0)
    k_param, k_in, k_eps = jax.random.split(key, 3)
    params = init_params(args, k_param)
    fused = build_fused_params(params, args)

    ks = iter(jax.random.split(k_in, 32))

    def u(shape):
        return jax.random.uniform(next(ks), shape, dtype=jnp.float32)

    def ints(shape, hi):
        return jax.random.randint(next(ks), shape, 0, hi, dtype=jnp.int32)

    inputs = {
        "boil_time": u((B,)),
        "mash_ph": u((B,)),
        "sparge_temp": u((B,)),
        "mash_step_type_inds": ints((B, args.num_mash_steps), args.num_mash_step_types),
        "mash_step_times": u((B, args.num_mash_steps)),
        "mash_step_avg_temps": u((B, args.num_mash_steps)),
        "ferment_stage_times": u((B, args.num_ferment_stages)),
        "ferment_stage_temps": u((B, args.num_ferment_stages)),
        "grain_core_type_inds": ints((B, args.num_grain_slots), args.num_grain_types),
        "grain_amts": u((B, args.num_grain_slots)),
        "adjunct_core_type_inds": ints((B, args.num_adjunct_slots), args.num_adjunct_types),
        "adjunct_amts": u((B, args.num_adjunct_slots)),
        "hop_type_inds": ints((B, args.num_hop_slots), args.num_hop_types),
        "hop_stage_type_inds": ints((B, args.num_hop_slots), args.num_hop_stage_types),
        "hop_times": u((B, args.num_hop_slots)),
        "hop_concentrations": u((B, args.num_hop_slots)),
        "misc_type_inds": ints((B, args.num_misc_slots), args.num_misc_types),
        "misc_stage_inds": ints((B, args.num_misc_slots), args.num_misc_stage_types),
        "misc_times": u((B, args.num_misc_slots)),
        "misc_amts": u((B, args.num_misc_slots)),
        "mo_type_inds": ints((B, args.num_microorganism_slots), args.num_microorganism_types),
        "mo_stage_inds": ints((B, args.num_microorganism_slots), args.num_mo_stage_types),
    }

    eps = jax.random.normal(k_eps, (B, args.z_size), dtype=jnp.float32)

    heads, foots, mean, logvar, z = recipe_net_forward(params, fused, args, inputs, eps, use_mean=False)
    jax.block_until_ready((heads, foots, mean, logvar, z))

    # ---- shape sanity ----
    assert mean.shape == (B, args.z_size)
    assert logvar.shape == (B, args.z_size)
    assert z.shape == (B, args.z_size)
    assert foots["x_hat_toplvl"].shape == (B, args.num_toplvl_inputs)
    assert foots["dec_grain_type_logits"].shape == (B, args.num_grain_slots, args.num_grain_types)
    assert foots["dec_adjunct_type_logits"].shape == (B, args.num_adjunct_slots, args.num_adjunct_types)
    assert foots["dec_hop_type_logits"].shape == (B, args.num_hop_slots, args.num_hop_types)
    assert foots["dec_misc_type_logits"].shape == (B, args.num_misc_slots, args.num_misc_types)
    assert foots["dec_mo_type_logits"].shape == (B, args.num_microorganism_slots, args.num_microorganism_types)

    # ---- numerical sanity vs pure-JAX f32 reference of the same forward ----
    x_cat, _ = head_encoder(params, args, inputs)
    r_mean, r_logvar, r_z, r_xhat, r_logits = reference_forward(params, fused, x_cat, eps, use_mean=False)
    _check("mean", mean, r_mean)
    _check("logvar", logvar, r_logvar)
    _check("z", z, r_z)
    xhat_from_foots = jnp.concatenate(
        [foots["x_hat_toplvl"], foots["x_hat_mash_steps"], foots["x_hat_ferment_stages"],
         foots["x_hat_grains"], foots["x_hat_adjuncts"], foots["x_hat_hops"],
         foots["x_hat_miscs"], foots["x_hat_mos"]], axis=1)
    _check("x_hat", xhat_from_foots, r_xhat)
    for name in ["grain", "adjunct", "hop", "misc", "mo"]:
        _check(f"{name}_type_logits", foots[f"dec_{name}_type_logits"], r_logits[name])

    print("KERNEL_OK")
</pallas_src>

<mosaic_0001>
module attributes {stable_mosaic.version = 11 : i64} {
  func.func @_recipe_vae_kernel(%arg0: i32, %arg1: memref<8x256xbf16, #tpu.memory_space<vmem>>, %arg2: memref<8x128xf32, #tpu.memory_space<vmem>>, %arg3: memref<256x128xbf16, #tpu.memory_space<vmem>>, %arg4: memref<1x128xf32, #tpu.memory_space<vmem>>, %arg5: memref<128x128xbf16, #tpu.memory_space<vmem>>, %arg6: memref<1x128xf32, #tpu.memory_space<vmem>>, %arg7: memref<128x256xbf16, #tpu.memory_space<vmem>>, %arg8: memref<1x256xf32, #tpu.memory_space<vmem>>, %arg9: memref<128x128xbf16, #tpu.memory_space<vmem>>, %arg10: memref<1x128xf32, #tpu.memory_space<vmem>>, %arg11: memref<128x128xbf16, #tpu.memory_space<vmem>>, %arg12: memref<1x128xf32, #tpu.memory_space<vmem>>, %arg13: memref<128x256xbf16, #tpu.memory_space<vmem>>, %arg14: memref<1x256xf32, #tpu.memory_space<vmem>>, %arg15: memref<128x256xbf16, #tpu.memory_space<vmem>>, %arg16: memref<1x256xf32, #tpu.memory_space<vmem>>, %arg17: memref<8x256xf32, #tpu.memory_space<vmem>>, %arg18: memref<8x256xbf16, #tpu.memory_space<vmem>>, %arg19: memref<8x256xbf16, #tpu.memory_space<vmem>>) attributes {dimension_semantics = [#tpu.dimension_semantics<parallel>], iteration_bounds = array<i64: 1>, scalar_prefetch = 0 : i64, scratch_operands = 0 : i64, tpu.core_type = #tpu.core_type<tc>, window_params = [{transform_indices = @transform_0, window_bounds = array<i64: 8, 256>}, {transform_indices = @transform_1, window_bounds = array<i64: 8, 128>}, {pipeline_mode = #tpu.pipeline_mode<synchronous>, transform_indices = @transform_2, window_bounds = array<i64: 256, 128>}, {pipeline_mode = #tpu.pipeline_mode<synchronous>, transform_indices = @transform_3, window_bounds = array<i64: 1, 128>}, {pipeline_mode = #tpu.pipeline_mode<synchronous>, transform_indices = @transform_4, window_bounds = array<i64: 128, 128>}, {pipeline_mode = #tpu.pipeline_mode<synchronous>, transform_indices = @transform_5, window_bounds = array<i64: 1, 128>}, {pipeline_mode = #tpu.pipeline_mode<synchronous>, transform_indices = @transform_6, window_bounds = array<i64: 128, 256>}, {pipeline_mode = #tpu.pipeline_mode<synchronous>, transform_indices = @transform_7, window_bounds = array<i64: 1, 256>}, {pipeline_mode = #tpu.pipeline_mode<synchronous>, transform_indices = @transform_8, window_bounds = array<i64: 128, 128>}, {pipeline_mode = #tpu.pipeline_mode<synchronous>, transform_indices = @transform_9, window_bounds = array<i64: 1, 128>}, {pipeline_mode = #tpu.pipeline_mode<synchronous>, transform_indices = @transform_10, window_bounds = array<i64: 128, 128>}, {pipeline_mode = #tpu.pipeline_mode<synchronous>, transform_indices = @transform_11, window_bounds = array<i64: 1, 128>}, {pipeline_mode = #tpu.pipeline_mode<synchronous>, transform_indices = @transform_12, window_bounds = array<i64: 128, 256>}, {pipeline_mode = #tpu.pipeline_mode<synchronous>, transform_indices = @transform_13, window_bounds = array<i64: 1, 256>}, {pipeline_mode = #tpu.pipeline_mode<synchronous>, transform_indices = @transform_14, window_bounds = array<i64: 128, 256>}, {pipeline_mode = #tpu.pipeline_mode<synchronous>, transform_indices = @transform_15, window_bounds = array<i64: 1, 256>}, {transform_indices = @transform_16, window_bounds = array<i64: 8, 256>}, {transform_indices = @transform_17, window_bounds = array<i64: 8, 256>}, {transform_indices = @transform_18, window_bounds = array<i64: 8, 256>}]} {
    %c0 = arith.constant 0 : index
    %c0_0 = arith.constant 0 : index
    %0 = vector.load %arg1[%c0, %c0_0] : memref<8x256xbf16, #tpu.memory_space<vmem>>, vector<8x256xbf16>
    %c0_1 = arith.constant 0 : index
    %c0_2 = arith.constant 0 : index
    %1 = vector.load %arg3[%c0_1, %c0_2] : memref<256x128xbf16, #tpu.memory_space<vmem>>, vector<256x128xbf16>
    %cst = arith.constant dense<0.000000e+00> : vector<8x128xf32>
    %2 = tpu.matmul %0, %1, %cst {dimension_numbers = #tpu.dot_dimension_numbers<[1], [0], [0], [1], [0, 0, 1, 1], [], []>} : vector<8x256xbf16>, vector<256x128xbf16>, vector<8x128xf32> -> vector<8x128xf32>
    %c0_3 = arith.constant 0 : index
    %c0_4 = arith.constant 0 : index
    %3 = vector.load %arg4[%c0_3, %c0_4] : memref<1x128xf32, #tpu.memory_space<vmem>>, vector<1x128xf32>
    %4 = vector.broadcast %3 : vector<1x128xf32> to vector<8x128xf32>
    %5 = arith.addf %2, %4 : vector<8x128xf32>
    %cst_5 = arith.constant 0.000000e+00 : f32
    %6 = vector.broadcast %cst_5 : f32 to vector<8x128xf32>
    %7 = arith.maximumf %5, %6 : vector<8x128xf32>
    %8 = arith.truncf %7 : vector<8x128xf32> to vector<8x128xbf16>
    %c0_6 = arith.constant 0 : index
    %c0_7 = arith.constant 0 : index
    %9 = vector.load %arg5[%c0_6, %c0_7] : memref<128x128xbf16, #tpu.memory_space<vmem>>, vector<128x128xbf16>
    %cst_8 = arith.constant dense<0.000000e+00> : vector<8x128xf32>
    %10 = tpu.matmul %8, %9, %cst_8 {dimension_numbers = #tpu.dot_dimension_numbers<[1], [0], [0], [1], [0, 0, 1, 1], [], []>} : vector<8x128xbf16>, vector<128x128xbf16>, vector<8x128xf32> -> vector<8x128xf32>
    %c0_9 = arith.constant 0 : index
    %c0_10 = arith.constant 0 : index
    %11 = vector.load %arg6[%c0_9, %c0_10] : memref<1x128xf32, #tpu.memory_space<vmem>>, vector<1x128xf32>
    %12 = vector.broadcast %11 : vector<1x128xf32> to vector<8x128xf32>
    %13 = arith.addf %10, %12 : vector<8x128xf32>
    %cst_11 = arith.constant 0.000000e+00 : f32
    %14 = vector.broadcast %cst_11 : f32 to vector<8x128xf32>
    %15 = arith.maximumf %13, %14 : vector<8x128xf32>
    %16 = arith.truncf %15 : vector<8x128xf32> to vector<8x128xbf16>
    %c0_12 = arith.constant 0 : index
    %c0_13 = arith.constant 0 : index
    %17 = vector.load %arg7[%c0_12, %c0_13] : memref<128x256xbf16, #tpu.memory_space<vmem>>, vector<128x256xbf16>
    %cst_14 = arith.constant dense<0.000000e+00> : vector<8x256xf32>
    %18 = tpu.matmul %16, %17, %cst_14 {dimension_numbers = #tpu.dot_dimension_numbers<[1], [0], [0], [1], [0, 0, 1, 1], [], []>} : vector<8x128xbf16>, vector<128x256xbf16>, vector<8x256xf32> -> vector<8x256xf32>
    %c0_15 = arith.constant 0 : index
    %c0_16 = arith.constant 0 : index
    %19 = vector.load %arg8[%c0_15, %c0_16] : memref<1x256xf32, #tpu.memory_space<vmem>>, vector<1x256xf32>
    %20 = vector.broadcast %19 : vector<1x256xf32> to vector<8x256xf32>
    %21 = arith.addf %18, %20 : vector<8x256xf32>
    %c0_17 = arith.constant 0 : index
    %c0_18 = arith.constant 0 : index
    %22 = vector.load %arg17[%c0_17, %c0_18] : memref<8x256xf32, #tpu.memory_space<vmem>>, vector<8x256xf32>
    tpu.vector_store %arg17[%c0_17, %c0_18], %21 {strides = array<i32>} : memref<8x256xf32, #tpu.memory_space<vmem>>, vector<8x256xf32>,
    %23 = vector.extract_strided_slice %21 {offsets = [0, 0], sizes = [8, 128], strides = [1, 1]} : vector<8x256xf32> to vector<8x128xf32>
    %24 = vector.extract_strided_slice %21 {offsets = [0, 128], sizes = [8, 128], strides = [1, 1]} : vector<8x256xf32> to vector<8x128xf32>
    %c0_19 = arith.constant 0 : index
    %c0_20 = arith.constant 0 : index
    %25 = vector.load %arg2[%c0_19, %c0_20] : memref<8x128xf32, #tpu.memory_space<vmem>>, vector<8x128xf32>
    %cst_21 = arith.constant 5.000000e-01 : f32
    %26 = vector.broadcast %cst_21 : f32 to vector<8x128xf32>
    %27 = arith.mulf %26, %24 : vector<8x128xf32>
    %28 = math.exp %27 : vector<8x128xf32>
    %29 = arith.mulf %25, %28 : vector<8x128xf32>
    %30 = arith.addf %29, %23 : vector<8x128xf32>
    %31 = arith.truncf %30 : vector<8x128xf32> to vector<8x128xbf16>
    %c0_22 = arith.constant 0 : index
    %c0_23 = arith.constant 0 : index
    %32 = vector.load %arg9[%c0_22, %c0_23] : memref<128x128xbf16, #tpu.memory_space<vmem>>, vector<128x128xbf16>
    %cst_24 = arith.constant dense<0.000000e+00> : vector<8x128xf32>
    %33 = tpu.matmul %31, %32, %cst_24 {dimension_numbers = #tpu.dot_dimension_numbers<[1], [0], [0], [1], [0, 0, 1, 1], [], []>} : vector<8x128xbf16>, vector<128x128xbf16>, vector<8x128xf32> -> vector<8x128xf32>
    %c0_25 = arith.constant 0 : index
    %c0_26 = arith.constant 0 : index
    %34 = vector.load %arg10[%c0_25, %c0_26] : memref<1x128xf32, #tpu.memory_space<vmem>>, vector<1x128xf32>
    %35 = vector.broadcast %34 : vector<1x128xf32> to vector<8x128xf32>
    %36 = arith.addf %33, %35 : vector<8x128xf32>
    %cst_27 = arith.constant 0.000000e+00 : f32
    %37 = vector.broadcast %cst_27 : f32 to vector<8x128xf32>
    %38 = arith.maximumf %36, %37 : vector<8x128xf32>
    %39 = arith.truncf %38 : vector<8x128xf32> to vector<8x128xbf16>
    %c0_28 = arith.constant 0 : index
    %c0_29 = arith.constant 0 : index
    %40 = vector.load %arg11[%c0_28, %c0_29] : memref<128x128xbf16, #tpu.memory_space<vmem>>, vector<128x128xbf16>
    %cst_30 = arith.constant dense<0.000000e+00> : vector<8x128xf32>
    %41 = tpu.matmul %39, %40, %cst_30 {dimension_numbers = #tpu.dot_dimension_numbers<[1], [0], [0], [1], [0, 0, 1, 1], [], []>} : vector<8x128xbf16>, vector<128x128xbf16>, vector<8x128xf32> -> vector<8x128xf32>
    %c0_31 = arith.constant 0 : index
    %c0_32 = arith.constant 0 : index
    %42 = vector.load %arg12[%c0_31, %c0_32] : memref<1x128xf32, #tpu.memory_space<vmem>>, vector<1x128xf32>
    %43 = vector.broadcast %42 : vector<1x128xf32> to vector<8x128xf32>
    %44 = arith.addf %41, %43 : vector<8x128xf32>
    %cst_33 = arith.constant 0.000000e+00 : f32
    %45 = vector.broadcast %cst_33 : f32 to vector<8x128xf32>
    %46 = arith.maximumf %44, %45 : vector<8x128xf32>
    %47 = arith.truncf %46 : vector<8x128xf32> to vector<8x128xbf16>
    %c0_34 = arith.constant 0 : index
    %c0_35 = arith.constant 0 : index
    %48 = vector.load %arg13[%c0_34, %c0_35] : memref<128x256xbf16, #tpu.memory_space<vmem>>, vector<128x256xbf16>
    %cst_36 = arith.constant dense<0.000000e+00> : vector<8x256xf32>
    %49 = tpu.matmul %47, %48, %cst_36 {dimension_numbers = #tpu.dot_dimension_numbers<[1], [0], [0], [1], [0, 0, 1, 1], [], []>} : vector<8x128xbf16>, vector<128x256xbf16>, vector<8x256xf32> -> vector<8x256xf32>
    %c0_37 = arith.constant 0 : index
    %c0_38 = arith.constant 0 : index
    %50 = vector.load %arg14[%c0_37, %c0_38] : memref<1x256xf32, #tpu.memory_space<vmem>>, vector<1x256xf32>
    %51 = vector.broadcast %50 : vector<1x256xf32> to vector<8x256xf32>
    %52 = arith.addf %49, %51 : vector<8x256xf32>
    %53 = arith.truncf %52 : vector<8x256xf32> to vector<8x256xbf16>
    %c0_39 = arith.constant 0 : index
    %c0_40 = arith.constant 0 : index
    %54 = vector.load %arg18[%c0_39, %c0_40] : memref<8x256xbf16, #tpu.memory_space<vmem>>, vector<8x256xbf16>
    tpu.vector_store %arg18[%c0_39, %c0_40], %53 {strides = array<i32>} : memref<8x256xbf16, #tpu.memory_space<vmem>>, vector<8x256xbf16>,
    %c0_41 = arith.constant 0 : index
    %c0_42 = arith.constant 0 : index
    %55 = vector.load %arg15[%c0_41, %c0_42] : memref<128x256xbf16, #tpu.memory_space<vmem>>, vector<128x256xbf16>
    %cst_43 = arith.constant dense<0.000000e+00> : vector<8x256xf32>
    %56 = tpu.matmul %47, %55, %cst_43 {dimension_numbers = #tpu.dot_dimension_numbers<[1], [0], [0], [1], [0, 0, 1, 1], [], []>} : vector<8x128xbf16>, vector<128x256xbf16>, vector<8x256xf32> -> vector<8x256xf32>
    %c0_44 = arith.constant 0 : index
    %c0_45 = arith.constant 0 : index
    %57 = vector.load %arg16[%c0_44, %c0_45] : memref<1x256xf32, #tpu.memory_space<vmem>>, vector<1x256xf32>
    %58 = vector.broadcast %57 : vector<1x256xf32> to vector<8x256xf32>
    %59 = arith.addf %56, %58 : vector<8x256xf32>
    %60 = arith.truncf %59 : vector<8x256xf32> to vector<8x256xbf16>
    %c0_46 = arith.constant 0 : index
    %c0_47 = arith.constant 0 : index
    %61 = vector.load %arg19[%c0_46, %c0_47] : memref<8x256xbf16, #tpu.memory_space<vmem>>, vector<8x256xbf16>
    tpu.vector_store %arg19[%c0_46, %c0_47], %60 {strides = array<i32>} : memref<8x256xbf16, #tpu.memory_space<vmem>>, vector<8x256xbf16>,
    return
  }
  func.func @transform_0(%arg0: i32) -> (i32, i32) {
    %c0_i32 = arith.constant 0 : i32
    %c0_i32_0 = arith.constant 0 : i32
    return %arg0, %c0_i32 : i32, i32
  }
  func.func @transform_1(%arg0: i32) -> (i32, i32) {
    %c0_i32 = arith.constant 0 : i32
    %c0_i32_0 = arith.constant 0 : i32
    return %arg0, %c0_i32 : i32, i32
  }
  func.func @transform_2(%arg0: i32) -> (i32, i32) {
    %c0_i32 = arith.constant 0 : i32
    %c0_i32_0 = arith.constant 0 : i32
    %c0_i32_1 = arith.constant 0 : i32
    return %c0_i32, %c0_i32_0 : i32, i32
  }
  func.func @transform_3(%arg0: i32) -> (i32, i32) {
    %c0_i32 = arith.constant 0 : i32
    %c0_i32_0 = arith.constant 0 : i32
    %c0_i32_1 = arith.constant 0 : i32
    return %c0_i32, %c0_i32_0 : i32, i32
  }
  func.func @transform_4(%arg0: i32) -> (i32, i32) {
    %c0_i32 = arith.constant 0 : i32
    %c0_i32_0 = arith.constant 0 : i32
    %c0_i32_1 = arith.constant 0 : i32
    return %c0_i32, %c0_i32_0 : i32, i32
  }
  func.func @transform_5(%arg0: i32) -> (i32, i32) {
    %c0_i32 = arith.constant 0 : i32
    %c0_i32_0 = arith.constant 0 : i32
    %c0_i32_1 = arith.constant 0 : i32
    return %c0_i32, %c0_i32_0 : i32, i32
  }
  func.func @transform_6(%arg0: i32) -> (i32, i32) {
    %c0_i32 = arith.constant 0 : i32
    %c0_i32_0 = arith.constant 0 : i32
    %c0_i32_1 = arith.constant 0 : i32
    return %c0_i32, %c0_i32_0 : i32, i32
  }
  func.func @transform_7(%arg0: i32) -> (i32, i32) {
    %c0_i32 = arith.constant 0 : i32
    %c0_i32_0 = arith.constant 0 : i32
    %c0_i32_1 = arith.constant 0 : i32
    return %c0_i32, %c0_i32_0 : i32, i32
  }
  func.func @transform_8(%arg0: i32) -> (i32, i32) {
    %c0_i32 = arith.constant 0 : i32
    %c0_i32_0 = arith.constant 0 : i32
    %c0_i32_1 = arith.constant 0 : i32
    return %c0_i32, %c0_i32_0 : i32, i32
  }
  func.func @transform_9(%arg0: i32) -> (i32, i32) {
    %c0_i32 = arith.constant 0 : i32
    %c0_i32_0 = arith.constant 0 : i32
    %c0_i32_1 = arith.constant 0 : i32
    return %c0_i32, %c0_i32_0 : i32, i32
  }
  func.func @transform_10(%arg0: i32) -> (i32, i32) {
    %c0_i32 = arith.constant 0 : i32
    %c0_i32_0 = arith.constant 0 : i32
    %c0_i32_1 = arith.constant 0 : i32
    return %c0_i32, %c0_i32_0 : i32, i32
  }
  func.func @transform_11(%arg0: i32) -> (i32, i32) {
    %c0_i32 = arith.constant 0 : i32
    %c0_i32_0 = arith.constant 0 : i32
    %c0_i32_1 = arith.constant 0 : i32
    return %c0_i32, %c0_i32_0 : i32, i32
  }
  func.func @transform_12(%arg0: i32) -> (i32, i32) {
    %c0_i32 = arith.constant 0 : i32
    %c0_i32_0 = arith.constant 0 : i32
    %c0_i32_1 = arith.constant 0 : i32
    return %c0_i32, %c0_i32_0 : i32, i32
  }
  func.func @transform_13(%arg0: i32) -> (i32, i32) {
    %c0_i32 = arith.constant 0 : i32
    %c0_i32_0 = arith.constant 0 : i32
    %c0_i32_1 = arith.constant 0 : i32
    return %c0_i32, %c0_i32_0 : i32, i32
  }
  func.func @transform_14(%arg0: i32) -> (i32, i32) {
    %c0_i32 = arith.constant 0 : i32
    %c0_i32_0 = arith.constant 0 : i32
    %c0_i32_1 = arith.constant 0 : i32
    return %c0_i32, %c0_i32_0 : i32, i32
  }
  func.func @transform_15(%arg0: i32) -> (i32, i32) {
    %c0_i32 = arith.constant 0 : i32
    %c0_i32_0 = arith.constant 0 : i32
    %c0_i32_1 = arith.constant 0 : i32
    return %c0_i32, %c0_i32_0 : i32, i32
  }
  func.func @transform_16(%arg0: i32) -> (i32, i32) {
    %c0_i32 = arith.constant 0 : i32
    %c0_i32_0 = arith.constant 0 : i32
    return %arg0, %c0_i32 : i32, i32
  }
  func.func @transform_17(%arg0: i32) -> (i32, i32) {
    %c0_i32 = arith.constant 0 : i32
    %c0_i32_0 = arith.constant 0 : i32
    return %arg0, %c0_i32 : i32, i32
  }
  func.func @transform_18(%arg0: i32) -> (i32, i32) {
    %c0_i32 = arith.constant 0 : i32
    %c0_i32_0 = arith.constant 0 : i32
    return %arg0, %c0_i32 : i32, i32
  }
}

</mosaic_0001>

<bundles_post_ra>
// kernel: tpu_custom_call.1
= control target key start
LH: loop header
LB: loop body
LE: loop exit
PB: predicated region body
PF: predicated region fallthrough
CT: control target
= control target key end

     0   :  { %s2052_s0 = inlined_call_operand.hbm [shape: bf16[8,256], index: 0, kind: input, shape index: {}]   ;;  %s2053_s1 = inlined_call_operand.hbm [shape: f32[8,128], index: 1, kind: input, shape index: {}]   ;;  %s2054_s2 = inlined_call_operand.hbm [shape: bf16[256,128], index: 2, kind: input, shape index: {}]   ;;  %s2055_s3 = inlined_call_operand.vmem [shape: f32[1,128], index: 3, kind: input, shape index: {}]   ;;  %s2056_s4 = inlined_call_operand.hbm [shape: bf16[128,128], index: 4, kind: input, shape index: {}]   ;;  %s2057_s5 = inlined_call_operand.vmem [shape: f32[1,128], index: 5, kind: input, shape index: {}]   ;;  %s2058_s6 = inlined_call_operand.hbm [shape: bf16[128,256], index: 6, kind: input, shape index: {}]   ;;  %s2059_s7 = inlined_call_operand.vmem [shape: f32[1,256], index: 7, kind: input, shape index: {}]   ;;  %s2060_s8 = inlined_call_operand.hbm [shape: bf16[128,128], index: 8, kind: input, shape index: {}]   ;;  %s2061_s9 = inlined_call_operand.vmem [shape: f32[1,128], index: 9, kind: input, shape index: {}]   ;;  %s2062_s10 = inlined_call_operand.hbm [shape: bf16[128,128], index: 10, kind: input, shape index: {}]   ;;  %s2063_s11 = inlined_call_operand.vmem [shape: f32[1,128], index: 11, kind: input, shape index: {}]   ;;  %s2064_s12 = inlined_call_operand.hbm [shape: bf16[128,256], index: 12, kind: input, shape index: {}]   ;;  %s2065_s13 = inlined_call_operand.vmem [shape: f32[1,256], index: 13, kind: input, shape index: {}]   ;;  %s2066_s14 = inlined_call_operand.hbm [shape: bf16[128,256], index: 14, kind: input, shape index: {}]   ;;  %s2067_s15 = inlined_call_operand.vmem [shape: f32[1,256], index: 15, kind: input, shape index: {}]   ;;  %s2068_s16 = inlined_call_operand.hbm [shape: f32[8,256], index: 16, kind: output, shape index: {0}]   ;;  %s2069_s17 = inlined_call_operand.hbm [shape: bf16[8,256], index: 17, kind: output, shape index: {1}]   ;;  %s2070_s18 = inlined_call_operand.hbm [shape: bf16[8,256], index: 18, kind: output, shape index: {2}]  }
   0x1   :  { %2071 = sst [smem:[#allocation28_spill]] %s2052_s0 }
   0x2   :  { %2072 = sst [smem:[#allocation29_spill]] %s2053_s1 }
   0x3   :  { %2073 = sst [smem:[#allocation30_spill]] %s2054_s2 }
   0x4   :  { %24 = vsyncpa [#allocation3], 0 }
   0x5   :  { %25 = vsyncpa [#allocation6], 0 }
   0x6   :  { %26 = vsyncpa [#allocation9], 0 }
   0x7   :  { %27 = vsyncpa [#allocation12], 0 }
   0x8   :  { %28 = vsyncpa [#allocation15], 0 }
   0x9   :  { %29 = vsyncpa [#allocation4], 0 }
   0xa   :  { %30 = vsyncpa [#allocation19], 0  ;;  %s1817_s27 = smov [#allocation5]  }
   0xb   :  { %s47_s28 = sshll.u32 %s1817_s27, 4  ;;  %s48_s28 = int_to_ptr.vmem [resolvable:$true] %s47_s28 }
   0xc   :  { %s1571_s29 = scalar_lea.vmem %s48_s28, 128  ;;  %p1576_p1 = scmp.lt.s32.totalorder %s48_s28, %s48_s28 }
   0xd   :  { %p1572_p0 = scmp.ne.s32.totalorder %s48_s28, %s1571_s29  ;;  %p1577_p2 = scmp.lt.s32.totalorder %s1571_s29, %s1571_s29 }
   0xf   :  { %p1578_p3 = por %p1577_p2, %p1576_p1 }
  0x11   :  { %p1579_p4 = pnand %p1578_p3, %p1572_p0 }
  0x13   :  { %1582 = shalt.err (!%p1579_p4)
}
  0x14   :  { %s2074_s19 = sld [smem:[#allocation29_spill]]  ;;  %s1818_s1 = smov [#allocation8]  }
  0x15   :  { %s70_s20 = sshll.u32 %s1818_s1, 4  ;;  %s1819_s21 = smov [#allocation11]   ;;  %s71_s20 = int_to_ptr.vmem [resolvable:$true] %s70_s20 }
  0x16   :  { %s98_s22 = sshll.u32 %s1819_s21, 4  ;;  %s1591_s2 = scalar_lea.vmem %s71_s20, 1024  ;;  %s99_s22 = int_to_ptr.vmem [resolvable:$true] %s98_s22 }
  0x17   :  { %p1592_p5 = scmp.ne.s32.totalorder %s71_s20, %s1591_s2  ;;  %p1596_p6 = scmp.lt.s32.totalorder %s71_s20, %s71_s20 }
  0x18   :  { %p1597_p7 = scmp.lt.s32.totalorder %s1591_s2, %s1591_s2 }
  0x1a   :  { %50 = dma.hbm_to_vmem [thread:$0]  %s2074_s19, 128, %s48_s28, [#allocation6]  }
  0x1b   :  { %p1598_p8 = por %p1597_p7, %p1596_p6 }
  0x1d   :  { %p1599_p9 = pnand %p1598_p8, %p1592_p5 }
  0x1f   :  { %1602 = shalt.err (!%p1599_p9)
}
  0x20   :  { %s1820_s23 = smov 64   ;;  %s1821_s24 = smov 4  }
  0x21   :  { %76 = dma.hbm_to_vmem [thread:$0]  %s2056_s4, 1024, %s71_s20, [#allocation9], %s1820_s23, %s1820_s23, %s1821_s24  }
  0x22   :  { %s1611_s27 = scalar_lea.vmem %s99_s22, 1024  ;;  %p1616_p11 = scmp.lt.s32.totalorder %s99_s22, %s99_s22 }
  0x23   :  { %p1612_p10 = scmp.ne.s32.totalorder %s99_s22, %s1611_s27  ;;  %p1617_p12 = scmp.lt.s32.totalorder %s1611_s27, %s1611_s27 }
  0x25   :  { %p1618_p13 = por %p1617_p12, %p1616_p11 }
  0x27   :  { %p1619_p0 = pnand %p1618_p13, %p1612_p10 }
  0x29   :  { %1622 = shalt.err (!%p1619_p0)
}
  0x2a   :  { %104 = dma.hbm_to_vmem [thread:$0]  %s2060_s8, 1024, %s99_s22, [#allocation12], %s1820_s23, %s1820_s23, %s1821_s24  }
  0x2b   :  { %s1822_s30 = smov [#allocation14]   ;;  %s1823_s19 = smov [#allocation2]  }
  0x2c   :  { %s126_s0 = sshll.u32 %s1822_s30, 4  ;;  %s37_s4 = sshll.u32 %s1823_s19, 4  ;;  %s127_s0 = int_to_ptr.vmem [resolvable:$true] %s126_s0  ;;  %s38_s4 = int_to_ptr.vmem [resolvable:$true] %s37_s4 }
  0x2d   :  { %s1631_s1 = scalar_lea.vmem %s127_s0, 2048  ;;  %p1636_p2 = scmp.lt.s32.totalorder %s127_s0, %s127_s0 }
  0x2e   :  { %p1632_p1 = scmp.ne.s32.totalorder %s127_s0, %s1631_s1  ;;  %p1637_p3 = scmp.lt.s32.totalorder %s1631_s1, %s1631_s1 }
  0x30   :  { %p1638_p4 = por %p1637_p3, %p1636_p2 }
  0x32   :  { %p1639_p5 = pnand %p1638_p4, %p1632_p1 }
  0x34   :  { %1642 = shalt.err (!%p1639_p5)
}
  0x35   :  { %s1824_s20 = smov 128   ;;  %s1825_s21 = smov 8  }
  0x36   :  { %132 = dma.hbm_to_vmem [thread:$0]  %s2064_s12, 2048, %s127_s0, [#allocation15], %s1824_s20, %s1824_s20, %s1825_s21  }
  0x37   :  { %s1651_s8 = scalar_lea.vmem %s38_s4, 128  ;;  %p1656_p7 = scmp.lt.s32.totalorder %s38_s4, %s38_s4 }
  0x38   :  { %p1652_p6 = scmp.ne.s32.totalorder %s38_s4, %s1651_s8  ;;  %p1657_p8 = scmp.lt.s32.totalorder %s1651_s8, %s1651_s8 }
  0x3a   :  { %p1658_p9 = por %p1657_p8, %p1656_p7 }
  0x3c   :  { %p1659_p10 = pnand %p1658_p9, %p1652_p6 }
  0x3e   :  { %1662 = shalt.err (!%p1659_p10)
}
  0x3f   :  { %s2075_s27 = sld [smem:[#allocation28_spill]]  ;;  %s1826_s28 = smov [#allocation7]  }
  0x40   :  { %s56_s29 = sshll.u32 %s1826_s28, 4  ;;  %s1827_s30 = smov [#allocation10]   ;;  %s57_s29 = int_to_ptr.vmem [resolvable:$true] %s56_s29 }
  0x41   :  { %s84_s19 = sshll.u32 %s1827_s30, 4  ;;  %s1671_s1 = scalar_lea.vmem %s57_s29, 2048  ;;  %s85_s19 = int_to_ptr.vmem [resolvable:$true] %s84_s19 }
  0x42   :  { %p1672_p11 = scmp.ne.s32.totalorder %s57_s29, %s1671_s1  ;;  %p1676_p12 = scmp.lt.s32.totalorder %s57_s29, %s57_s29 }
  0x43   :  { %p1677_p13 = scmp.lt.s32.totalorder %s1671_s1, %s1671_s1 }
  0x45   :  { %40 = dma.hbm_to_vmem [thread:$0]  %s2075_s27, 128, %s38_s4, [#allocation3]  }
  0x46   :  { %p1678_p0 = por %p1677_p13, %p1676_p12 }
  0x48   :  { %p1679_p1 = pnand %p1678_p0, %p1672_p11 }
  0x4a   :  { %1682 = shalt.err (!%p1679_p1)
}
  0x4b   :  { %s2076_s2 = sld [smem:[#allocation30_spill]]  ;;  %s1691_s4 = scalar_lea.vmem %s85_s19, 2048 }
  0x4c   :  { %p1692_p2 = scmp.ne.s32.totalorder %s85_s19, %s1691_s4  ;;  %p1696_p3 = scmp.lt.s32.totalorder %s85_s19, %s85_s19 }
  0x4d   :  { %p1697_p4 = scmp.lt.s32.totalorder %s1691_s4, %s1691_s4 }
  0x4f   :  { %p1698_p5 = por %p1697_p4, %p1696_p3 }
  0x51   :  { %62 = dma.hbm_to_vmem [thread:$0]  %s2076_s2, 2048, %s57_s29, [#allocation6], %s1820_s23, %s1820_s23, %s1821_s24  }
  0x52   :  { %p1699_p6 = pnand %p1698_p5, %p1692_p2 }
  0x54   :  { %1702 = shalt.err (!%p1699_p6)
}
  0x55   :  { %90 = dma.hbm_to_vmem [thread:$0]  %s2058_s6, 2048, %s85_s19, [#allocation9], %s1824_s20, %s1824_s20, %s1825_s21  }
  0x56   :  { %s1828_s22 = smov [#allocation13]   ;;  %s1829_s27 = smov [#allocation16]  }
  0x57   :  { %s112_s26 = sshll.u32 %s1828_s22, 4  ;;  %s140_s28 = sshll.u32 %s1829_s27, 4  ;;  %s113_s26 = int_to_ptr.vmem [resolvable:$true] %s112_s26  ;;  %s141_s28 = int_to_ptr.vmem [resolvable:$true] %s140_s28 }
  0x58   :  { %s1711_s29 = scalar_lea.vmem %s113_s26, 1024  ;;  %p1716_p8 = scmp.lt.s32.totalorder %s113_s26, %s113_s26 }
  0x59   :  { %p1712_p7 = scmp.ne.s32.totalorder %s113_s26, %s1711_s29  ;;  %p1717_p9 = scmp.lt.s32.totalorder %s1711_s29, %s1711_s29 }
  0x5b   :  { %p1718_p10 = por %p1717_p9, %p1716_p8 }
  0x5d   :  { %p1719_p11 = pnand %p1718_p10, %p1712_p7 }
  0x5f   :  { %1722 = shalt.err (!%p1719_p11)
}
  0x60   :  { %118 = dma.hbm_to_vmem [thread:$0]  %s2062_s10, 1024, %s113_s26, [#allocation12], %s1820_s23, %s1820_s23, %s1821_s24  }
  0x61   :  { %s1731_s6 = scalar_lea.vmem %s141_s28, 2048  ;;  %p1736_p13 = scmp.lt.s32.totalorder %s141_s28, %s141_s28 }
  0x62   :  { %p1732_p12 = scmp.ne.s32.totalorder %s141_s28, %s1731_s6  ;;  %p1737_p0 = scmp.lt.s32.totalorder %s1731_s6, %s1731_s6 }
  0x64   :  { %p1738_p1 = por %p1737_p0, %p1736_p13 }
  0x66   :  { %p1739_p2 = pnand %p1738_p1, %p1732_p12 }
  0x68   :  { %1742 = shalt.err (!%p1739_p2)
}
  0x69   :  { %146 = dma.hbm_to_vmem [thread:$0]  %s2066_s14, 2048, %s141_s28, [#allocation15], %s1824_s20, %s1824_s20, %s1825_s21  }
  0x6a   :  { %1803 = dma.done.wait [#allocation3], 128  }
  0x6b   :  { %1804 = vsyncadd [#allocation3], 4294967168 }
  0x6c   :  { %1805 = dma.done.wait [#allocation6], 2176  }
  0x6d   :  { %1806 = vsyncadd [#allocation6], 4294965120 }
  0x6e   :  { %1807 = dma.done.wait [#allocation9], 3072  }
  0x6f   :  { %1808 = vsyncadd [#allocation9], 4294964224 }
  0x70   :  { %1809 = dma.done.wait [#allocation12], 2048  }
  0x71   :  { %1810 = vsyncadd [#allocation12], 4294965248 }
  0x72   :  { %1811 = dma.done.wait [#allocation15], 4096  }
  0x73   :  { %1812 = vsyncadd [#allocation15], 4294963200  ;;  %v1830_v0 = vmov 0.0   ;;  %v1447_v1 = vld [vmem:[#allocation7 + $0x78] sm:$0xff]   ;;  %v1449_v3 = vld [vmem:[#allocation7 + $0x70] sm:$0xff]   ;;  %vm1831_vm0 = vmmov 0  }
  0x74   :  { %1368 = vmatprep.subr.bf16.mxu1 %v1830_v0  ;;  %v1448_v2 = vld [vmem:[#allocation7 + $0x38] sm:$0xff]   ;;  %1319 = vmatprep.subr.bf16.mxu0 %v1447_v1  ;;  %v1450_v4 = vld [vmem:[#allocation7 + $0x30] sm:$0xff]   ;;  %v1451_v5 = vld [vmem:[#allocation7 + $0x68] sm:$0xff]   ;;  %v1832_v53 = vmov 0   ;;  %s1833_s0 = smov [#allocation17]  }
  0x75   :  { %1320 = vmatpush3.bf16.msra.mxu0 %v1448_v2  ;;  %v1452_v6 = vld [vmem:[#allocation7 + $0x28] sm:$0xff]   ;;  %v1453_v7 = vld [vmem:[#allocation7 + $0x60] sm:$0xff]   ;;  %v1455_v9 = vld [vmem:[#allocation7 + $0x58] sm:$0xff]   ;;  %1384 = vmatprep.mubr.msk.bf16.mxu1 %vm1831_vm0, %v1830_v0  ;;  %s1181_s2 = sshll.u32 %s1833_s0, 4  ;;  %s1182_s2 = int_to_ptr.vmem [resolvable:$true] %s1181_s2 }
  0x76   :  { %1321 = vmatprep.subr.bf16.mxu0 %v1449_v3  ;;  %v1454_v8 = vld [vmem:[#allocation7 + $0x20] sm:$0xff]   ;;  %v1456_v10 = vld [vmem:[#allocation7 + $0x18] sm:$0xff]   ;;  %v1457_v11 = vld [vmem:[#allocation7 + $0x50] sm:$0xff]   ;;  %s1743_s4 = scalar_lea.vmem %s1182_s2, 256  ;;  %p1748_p4 = scmp.lt.s32.totalorder %s1182_s2, %s1182_s2 }
  0x77   :  { %v177_v12 = vld [vmem:[#allocation2] sm:$0xff]  ;;  %v1465_v14 = vld [vmem:[#allocation8 + $0x38] sm:$0xff]   ;;  %v1459_v16 = vld [vmem:[#allocation7 + $0x48] sm:$0xff]   ;;  %p1744_p3 = scmp.ne.s32.totalorder %s1182_s2, %s1743_s4  ;;  %p1749_p5 = scmp.lt.s32.totalorder %s1743_s4, %s1743_s4 }
  0x78   :  { %v1223_v13 = vcombine.high %v177_v12, %v177_v12  ;;  %v1458_v15 = vld [vmem:[#allocation7 + $0x10] sm:$0xff]   ;;  %1369 = vmatpush3.bf16.msra.mxu1 %v1465_v14  ;;  %v1460_v18 = vld [vmem:[#allocation7 + $0x8] sm:$0xff]   ;;  %v1461_v19 = vld [vmem:[#allocation7 + $0x40] sm:$0xff]   ;;  %v1222_v23 = vcombine.low %v177_v12, %v177_v12 }
  0x79   :  { %1322 = vmatpush3.bf16.msra.mxu0 %v1450_v4  ;;  %v1466_v17 = vld [vmem:[#allocation8 + $0x30] sm:$0xff]   ;;  %1370 = vmatprep.subr.bf16.mxu1 %v1830_v0  ;;  %v1467_v20 = vld [vmem:[#allocation8 + $0x28] sm:$0xff]   ;;  %v1462_v21 = vld [vmem:[#allocation7] sm:$0xff]   ;;  %p1750_p6 = por %p1749_p5, %p1748_p4 }
  0x7a   :  { %1323 = vmatprep.subr.bf16.mxu0 %v1451_v5  ;;  %352 = vmatprep.mubr.bf16.mxu0 %v1223_v13  ;;  %v1468_v22 = vld [vmem:[#allocation8 + $0x20] sm:$0xff]   ;;  %v1469_v24 = vld [vmem:[#allocation8 + $0x18] sm:$0xff]   ;;  %v1470_v25 = vld [vmem:[#allocation8 + $0x10] sm:$0xff]   ;;  %v493_v13 = vlaneseq }
  0x7b   :  { %v1471_v26 = vld [vmem:[#allocation8 + $0x8] sm:$0xff]   ;;  %v1472_v27 = vld [vmem:[#allocation8] sm:$0xff]   ;;  %v1473_v28 = vld [vmem:[#allocation10 + $0x70] ss:$8 sps:$4 sm:$0xff]   ;;  %p1751_p7 = pnand %p1750_p6, %p1744_p3 }
  0x7c   :  { %1371 = vmatpush3.bf16.msra.mxu1 %v1466_v17  ;;  %v1475_v29 = vld [vmem:[#allocation10 + $0x74] ss:$8 sps:$4 sm:$0xff]   ;;  %v1478_v30 = vld [vmem:[#allocation10 + $0x64] ss:$8 sps:$4 sm:$0xff]   ;;  %v1476_v31 = vld [vmem:[#allocation10 + $0x60] ss:$8 sps:$4 sm:$0xff]  }
  0x7d   :  { %1324 = vmatpush3.bf16.msra.mxu0 %v1452_v6  ;;  %1372 = vmatprep.subr.bf16.mxu1 %v1830_v0  ;;  %v1481_v32 = vld [vmem:[#allocation10 + $0x54] ss:$8 sps:$4 sm:$0xff]   ;;  %v1479_v33 = vld [vmem:[#allocation10 + $0x50] ss:$8 sps:$4 sm:$0xff]   ;;  %v1484_v34 = vld [vmem:[#allocation10 + $0x44] ss:$8 sps:$4 sm:$0xff]  }
  0x7e   :  { %1325 = vmatprep.subr.bf16.mxu0 %v1453_v7  ;;  %v1482_v35 = vld [vmem:[#allocation10 + $0x40] ss:$8 sps:$4 sm:$0xff]   ;;  %v1487_v36 = vld [vmem:[#allocation10 + $0x34] ss:$8 sps:$4 sm:$0xff]   ;;  %v1485_v37 = vld [vmem:[#allocation10 + $0x30] ss:$8 sps:$4 sm:$0xff]  }
  0x7f   :  { %v1490_v38 = vld [vmem:[#allocation10 + $0x24] ss:$8 sps:$4 sm:$0xff]   ;;  %v1488_v39 = vld [vmem:[#allocation10 + $0x20] ss:$8 sps:$4 sm:$0xff]   ;;  %v1493_v40 = vld [vmem:[#allocation10 + $0x14] ss:$8 sps:$4 sm:$0xff]  }
  0x80   :  { %1373 = vmatpush3.bf16.msra.mxu1 %v1467_v20  ;;  %v1491_v41 = vld [vmem:[#allocation10 + $0x10] ss:$8 sps:$4 sm:$0xff]   ;;  %v1496_v51 = vld [vmem:[#allocation10 + $0x4] ss:$8 sps:$4 sm:$0xff]   ;;  %v1494_v52 = vld [vmem:[#allocation10] ss:$8 sps:$4 sm:$0xff]  }
  0x81   :  { %1326 = vmatpush3.bf16.msra.mxu0 %v1454_v8  ;;  %1374 = vmatprep.subr.bf16.mxu1 %v1830_v0  ;;  %v1221_v43 = vld [vmem:[%s2055_s3] ss:$0 sm:$0xff]  ;;  %v1497_v54 = vld [vmem:[#allocation11 + $0x38] sm:$0xff]   ;;  %v1499_v1 = vld [vmem:[#allocation11 + $0x28] sm:$0xff]   ;;  %v494_v14 = vshrl.u32 %v493_v13, 7 }
  0x82   :  { %1327 = vmatprep.subr.bf16.mxu0 %v1455_v9  ;;  %v1240_v55 = vld [vmem:[%s2057_s5] ss:$0 sm:$0xff]  ;;  %v1500_v2 = vld [vmem:[#allocation11 + $0x20] sm:$0xff]   ;;  %v1501_v3 = vld [vmem:[#allocation11 + $0x18] sm:$0xff]  }
  0x83   :  { %v1498_v63 = vld [vmem:[#allocation11 + $0x30] sm:$0xff]   ;;  %v1503_v5 = vld [vmem:[#allocation11 + $0x8] sm:$0xff]   ;;  %v1504_v6 = vld [vmem:[#allocation11] sm:$0xff]   ;;  %v2020_v17 = vsub.s32 1, %v494_v14 }
  0x84   :  { %1375 = vmatpush3.bf16.msra.mxu1 %v1468_v22  ;;  %v1502_v4 = vld [vmem:[#allocation11 + $0x10] sm:$0xff]   ;;  %v1505_v7 = vld [vmem:[#allocation13 + $0x38] sm:$0xff]   ;;  %v1507_v9 = vld [vmem:[#allocation13 + $0x28] sm:$0xff]  }
  0x85   :  { %1328 = vmatpush3.bf16.msra.mxu0 %v1456_v10  ;;  %1376 = vmatprep.subr.bf16.mxu1 %v1830_v0  ;;  %v1506_v8 = vld [vmem:[#allocation13 + $0x30] sm:$0xff]   ;;  %v1508_v10 = vld [vmem:[#allocation13 + $0x20] sm:$0xff]  }
  0x86   :  { %1329 = vmatprep.subr.bf16.mxu0 %v1457_v11  ;;  %v1509_v11 = vld [vmem:[#allocation13 + $0x18] sm:$0xff]   ;;  %v1510_v12 = vld [vmem:[#allocation13 + $0x10] sm:$0xff]  }
  0x88   :  { %1377 = vmatpush3.bf16.msra.mxu1 %v1469_v24 }
  0x89   :  { %1330 = vmatpush3.bf16.msra.mxu0 %v1458_v15  ;;  %1378 = vmatprep.subr.bf16.mxu1 %v1830_v0  ;;  %v2015_v15 = vsub.s32 0, %v494_v14 }
  0x8a   :  { %1331 = vmatprep.subr.bf16.mxu0 %v1459_v16  ;;  %v491_v16 = vld [vmem:[%s2059_s7] sm:$0x3] }
  0x8c   :  { %1379 = vmatpush3.bf16.msra.mxu1 %v1470_v25 }
  0x8d   :  { %1332 = vmatpush3.bf16.msra.mxu0 %v1460_v18  ;;  %1380 = vmatprep.subr.bf16.mxu1 %v1830_v0  ;;  %v496_v18 = vrot.slane %v491_v16, %v2015_v15 }
  0x8e   :  { %1333 = vmatprep.subr.bf16.mxu0 %v1461_v19  ;;  %v500_v19 = vrot.slane %v491_v16, %v2020_v17 }
  0x90   :  { %1381 = vmatpush3.bf16.msra.mxu1 %v1471_v26 }
  0x91   :  { %1334 = vmatpush3.bf16.msra.mxu0 %v1462_v21  ;;  %1382 = vmatprep.subr.bf16.mxu1 %v1830_v0 }
  0x92   :  { %583 = vmatprep.subr.bf16.mxu0 %v1475_v29 }
  0x94   :  { %353 = vmatmul.mubr.bf16.vlgmr.msra.gmra.mxu0 %v1222_v23  ;;  %1383 = vmatpush3.bf16.msra.mxu1 %v1472_v27 }
  0x95   :  { %1388 = vmatprep.subr.bf16.mxu1 %v1830_v0  ;;  %584 = vmatpush1.bf16.msra.mxu0 %v1473_v28  ;;  %v626_v28 = vld [vmem:[#allocation5] sm:$0xff] }
  0x96   :  { %585 = vmatprep.subr.bf16.mxu0 %v1478_v30  ;;  %615 = vmatprep.mubr.bf16.mxu0 %v1832_v53 }
  0x99   :  { %586 = vmatpush1.bf16.msra.mxu0 %v1476_v31 }
  0x9a   :  { %587 = vmatprep.subr.bf16.mxu0 %v1481_v32 }
  0x9d   :  { %588 = vmatpush1.bf16.msra.mxu0 %v1479_v33  ;;  %v1511_v33 = vld [vmem:[#allocation13 + $0x8] sm:$0xff]  }
  0x9e   :  { %589 = vmatprep.subr.bf16.mxu0 %v1484_v34  ;;  %v1512_v34 = vld [vmem:[#allocation13] sm:$0xff]  }
  0xa1   :  { %590 = vmatpush1.bf16.msra.mxu0 %v1482_v35  ;;  %v1513_v35 = vld [vmem:[#allocation14 + $0x70] ss:$8 sps:$4 sm:$0xff]  }
  0xa2   :  { %591 = vmatprep.subr.bf16.mxu0 %v1487_v36  ;;  %v1515_v36 = vld [vmem:[#allocation14 + $0x74] ss:$8 sps:$4 sm:$0xff]  }
  0xa5   :  { %592 = vmatpush1.bf16.msra.mxu0 %v1485_v37  ;;  %v1518_v37 = vld [vmem:[#allocation16 + $0x74] ss:$8 sps:$4 sm:$0xff]  }
  0xa6   :  { %593 = vmatprep.subr.bf16.mxu0 %v1490_v38  ;;  %v1521_v38 = vld [vmem:[#allocation14 + $0x64] ss:$8 sps:$4 sm:$0xff]  }
  0xa9   :  { %594 = vmatpush1.bf16.msra.mxu0 %v1488_v39  ;;  %v1519_v39 = vld [vmem:[#allocation14 + $0x60] ss:$8 sps:$4 sm:$0xff]  }
  0xaa   :  { %595 = vmatprep.subr.bf16.mxu0 %v1493_v40  ;;  %v1527_v40 = vld [vmem:[#allocation14 + $0x54] ss:$8 sps:$4 sm:$0xff]  }
  0xad   :  { %596 = vmatpush1.bf16.msra.mxu0 %v1491_v41  ;;  %v1525_v41 = vld [vmem:[#allocation14 + $0x50] ss:$8 sps:$4 sm:$0xff]  }
  0xae   :  { %597 = vmatprep.subr.bf16.mxu0 %v1496_v51 }
  0xb1   :  { %598 = vmatpush1.bf16.msra.mxu0 %v1494_v52 }
  0xb2   :  { %1408 = vmatprep.subr.bf16.mxu0 %v1830_v0 }
 0x154   :  { %v1335_v42 = vpop.f32.mrf.mxu0 }
 0x156   :  { %v1336_v44 = vpop.f32.mrf.mxu0 }
 0x157   :  { %v1337_v45 = vadd.f32 %v1336_v44, %v1335_v42  ;;  %v1533_v42 = vld [vmem:[#allocation14 + $0x44] ss:$8 sps:$4 sm:$0xff]   ;;  %v1537_v44 = vld [vmem:[#allocation14 + $0x30] ss:$8 sps:$4 sm:$0xff]  }
 0x158   :  { %v1338_v46 = vpop.f32.mrf.mxu0 }
 0x159   :  { %v355_v47 = vadd.f32 %v1337_v45, %v1221_v43  ;;  %v1531_v43 = vld [vmem:[#allocation14 + $0x40] ss:$8 sps:$4 sm:$0xff]   ;;  %v1545_v45 = vld [vmem:[#allocation14 + $0x24] ss:$8 sps:$4 sm:$0xff]  }
 0x15a   :  { %v1339_v48 = vpop.f32.mrf.mxu0  ;;  %v1543_v46 = vld [vmem:[#allocation14 + $0x20] ss:$8 sps:$4 sm:$0xff]  }
 0x15b   :  { %v360_v49 = vmax.f32 %v355_v47, 0.0  ;;  %v1551_v47 = vld [vmem:[#allocation14 + $0x14] ss:$8 sps:$4 sm:$0xff]   ;;  %v1549_v48 = vld [vmem:[#allocation14 + $0x10] ss:$8 sps:$4 sm:$0xff]  }
 0x15d   :  { %v361_v50 = vpack.c.bf16 %v360_v49, %v360_v49  ;;  %v1265_v49 = vld [vmem:[%s2061_s9] ss:$0 sm:$0xff] }
 0x15f   :  { %1385 = vmatmul.mubr.bf16.vlgmr.msra.gmra.mxu1 %v361_v50 }
 0x160   :  { %1404 = vmatprep.mubr.msk.bf16.mxu1 %vm1831_vm0, %v1830_v0  ;;  %1389 = vmatpush3.bf16.msra.mxu1 %v1497_v54 }
 0x161   :  { %1390 = vmatprep.subr.bf16.mxu1 %v1830_v0 }
 0x164   :  { %1391 = vmatpush3.bf16.msra.mxu1 %v1498_v63  ;;  %v1536_v63 = vld [vmem:[#allocation16 + $0x44] ss:$8 sps:$4 sm:$0xff]  }
 0x165   :  { %1392 = vmatprep.subr.bf16.mxu1 %v1830_v0 }
 0x168   :  { %1393 = vmatpush3.bf16.msra.mxu1 %v1499_v1  ;;  %v1534_v1 = vld [vmem:[#allocation16 + $0x40] ss:$8 sps:$4 sm:$0xff]  }
 0x169   :  { %1394 = vmatprep.subr.bf16.mxu1 %v1830_v0 }
 0x16c   :  { %1395 = vmatpush3.bf16.msra.mxu1 %v1500_v2  ;;  %v1542_v2 = vld [vmem:[#allocation16 + $0x34] ss:$8 sps:$4 sm:$0xff]  }
 0x16d   :  { %1396 = vmatprep.subr.bf16.mxu1 %v1830_v0 }
 0x170   :  { %1397 = vmatpush3.bf16.msra.mxu1 %v1501_v3  ;;  %v1540_v3 = vld [vmem:[#allocation16 + $0x30] ss:$8 sps:$4 sm:$0xff]  }
 0x171   :  { %1398 = vmatprep.subr.bf16.mxu1 %v1830_v0 }
 0x174   :  { %1399 = vmatpush3.bf16.msra.mxu1 %v1502_v4  ;;  %v1548_v4 = vld [vmem:[#allocation16 + $0x24] ss:$8 sps:$4 sm:$0xff]  }
 0x175   :  { %1400 = vmatprep.subr.bf16.mxu1 %v1830_v0 }
 0x178   :  { %1401 = vmatpush3.bf16.msra.mxu1 %v1503_v5  ;;  %v1546_v5 = vld [vmem:[#allocation16 + $0x20] ss:$8 sps:$4 sm:$0xff]  }
 0x179   :  { %1402 = vmatprep.subr.bf16.mxu1 %v1830_v0 }
 0x17c   :  { %1403 = vmatpush3.bf16.msra.mxu1 %v1504_v6  ;;  %v1554_v6 = vld [vmem:[#allocation16 + $0x14] ss:$8 sps:$4 sm:$0xff]  }
 0x17d   :  { %967 = vmatprep.subr.bf16.mxu1 %v1515_v36 }
 0x21f   :  { %v467_v56 = vpop.f32.mrf.mxu1 }
 0x220   :  { %v468_v57 = vadd.f32 %v1240_v55, %v467_v56  ;;  %v1516_v56 = vld [vmem:[#allocation16 + $0x70] ss:$8 sps:$4 sm:$0xff]  }
 0x221   :  { %v1386_v58 = vpop.f32.mrf.mxu1 }
 0x222   :  { %v473_v59 = vmax.f32 %v468_v57, 0.0  ;;  %v1524_v58 = vld [vmem:[#allocation16 + $0x64] ss:$8 sps:$4 sm:$0xff]  }
 0x223   :  { %v470_v60 = vpop.f32.mrf.mxu1 }
 0x224   :  { %v474_v61 = vpack.c.bf16 %v473_v59, %v473_v59  ;;  %v1522_v60 = vld [vmem:[#allocation16 + $0x60] ss:$8 sps:$4 sm:$0xff]  }
 0x225   :  { %v1387_v62 = vpop.f32.mrf.mxu1 }
 0x226   :  { %616 = vmatmul.mubr.bf16.vlgmr.msra.gmra.mxu0 %v474_v61  ;;  %v1530_v61 = vld [vmem:[#allocation16 + $0x54] ss:$8 sps:$4 sm:$0xff]   ;;  %v1528_v62 = vld [vmem:[#allocation16 + $0x50] ss:$8 sps:$4 sm:$0xff]  }
 0x227   :  { %1424 = vmatprep.mubr.msk.bf16.mxu0 %vm1831_vm0, %v1830_v0  ;;  %1409 = vmatpush3.bf16.msra.mxu0 %v1505_v7  ;;  %v1557_v7 = vld [vmem:[#allocation14 + $0x4] ss:$8 sps:$4 sm:$0xff]  }
 0x228   :  { %1410 = vmatprep.subr.bf16.mxu0 %v1830_v0 }
 0x22b   :  { %1411 = vmatpush3.bf16.msra.mxu0 %v1506_v8  ;;  %v1560_v8 = vld [vmem:[#allocation16 + $0x4] ss:$8 sps:$4 sm:$0xff]  }
 0x22c   :  { %1412 = vmatprep.subr.bf16.mxu0 %v1830_v0 }
 0x22f   :  { %1413 = vmatpush3.bf16.msra.mxu0 %v1507_v9  ;;  %v1555_v9 = vld [vmem:[#allocation14] ss:$8 sps:$4 sm:$0xff]  }
 0x230   :  { %1414 = vmatprep.subr.bf16.mxu0 %v1830_v0 }
 0x233   :  { %1415 = vmatpush3.bf16.msra.mxu0 %v1508_v10  ;;  %v1558_v10 = vld [vmem:[#allocation16] ss:$8 sps:$4 sm:$0xff]  }
 0x234   :  { %1416 = vmatprep.subr.bf16.mxu0 %v1830_v0 }
 0x237   :  { %1417 = vmatpush3.bf16.msra.mxu0 %v1509_v11  ;;  %v1274_v11 = vld [vmem:[%s2063_s11] ss:$0 sm:$0xff] }
 0x238   :  { %1418 = vmatprep.subr.bf16.mxu0 %v1830_v0 }
 0x23b   :  { %1419 = vmatpush3.bf16.msra.mxu0 %v1510_v12 }
 0x23c   :  { %1420 = vmatprep.subr.bf16.mxu0 %v1830_v0 }
 0x23f   :  { %1421 = vmatpush3.bf16.msra.mxu0 %v1511_v33 }
 0x240   :  { %1422 = vmatprep.subr.bf16.mxu0 %v1830_v0  ;;  %v1539_v0 = vld [vmem:[#allocation14 + $0x34] ss:$8 sps:$4 sm:$0xff]  }
 0x243   :  { %1423 = vmatpush3.bf16.msra.mxu0 %v1512_v34 }
 0x244   :  { %1125 = vmatprep.subr.bf16.mxu0 %v1518_v37 }
 0x2e6   :  { %v617_v20 = vpop.f32.mrf.mxu0 }
 0x2e7   :  { %v618_v21 = vadd.f32 %v617_v20, %v496_v18 }
 0x2e8   :  { %v619_v22 = vpop.f32.mrf.mxu0 }
 0x2e9   :  { %624 = vst [vmem:[#allocation17] sm:$0xff] %v618_v21  ;;  %v620_v23 = vadd.f32 %v619_v22, %v500_v19 }
 0x2ea   :  { %v621_v24 = vpop.f32.mrf.mxu0 }
 0x2eb   :  { %625 = vst [vmem:[#allocation17 + $0x8] sm:$0xff] %v620_v23  ;;  %v627_v25 = vmul.f32 0.5, %v620_v23 }
 0x2ec   :  { %v622_v26 = vpop.f32.mrf.mxu0 }
 0x2ed   :  { %v628_v27 = vmul.f32 1.442695, %v627_v25 }
 0x2ef   :  { %1561 = vpow2.f32 %v628_v27 }
 0x2fc   :  { %v1562_v29 = vpop.eup %1561 }
 0x2fd   :  { %v630_v30 = vmul.f32 %v1562_v29, %v626_v28 }
 0x2ff   :  { %v631_v31 = vadd.f32 %v630_v30, %v618_v21 }
 0x301   :  { %v632_v32 = vpack.c.bf16 %v631_v31, %v631_v31 }
 0x303   :  { %1405 = vmatmul.mubr.bf16.vlgmr.msra.gmra.mxu1 %v632_v32 }
 0x304   :  { %999 = vmatprep.mubr.bf16.mxu1 %v1832_v53  ;;  %968 = vmatpush1.bf16.msra.mxu1 %v1513_v35 }
 0x305   :  { %969 = vmatprep.subr.bf16.mxu1 %v1521_v38 }
 0x308   :  { %970 = vmatpush1.bf16.msra.mxu1 %v1519_v39 }
 0x309   :  { %971 = vmatprep.subr.bf16.mxu1 %v1527_v40 }
 0x30c   :  { %972 = vmatpush1.bf16.msra.mxu1 %v1525_v41 }
 0x30d   :  { %973 = vmatprep.subr.bf16.mxu1 %v1533_v42 }
 0x310   :  { %974 = vmatpush1.bf16.msra.mxu1 %v1531_v43 }
 0x311   :  { %975 = vmatprep.subr.bf16.mxu1 %v1539_v0 }
 0x314   :  { %976 = vmatpush1.bf16.msra.mxu1 %v1537_v44 }
 0x315   :  { %977 = vmatprep.subr.bf16.mxu1 %v1545_v45 }
 0x318   :  { %978 = vmatpush1.bf16.msra.mxu1 %v1543_v46 }
 0x319   :  { %979 = vmatprep.subr.bf16.mxu1 %v1551_v47 }
 0x31c   :  { %980 = vmatpush1.bf16.msra.mxu1 %v1549_v48 }
 0x31d   :  { %981 = vmatprep.subr.bf16.mxu1 %v1557_v7 }
 0x320   :  { %982 = vmatpush1.bf16.msra.mxu1 %v1555_v9 }
 0x3c3   :  { %v738_v50 = vpop.f32.mrf.mxu1 }
 0x3c4   :  { %v739_v51 = vadd.f32 %v1265_v49, %v738_v50 }
 0x3c5   :  { %v1406_v52 = vpop.f32.mrf.mxu1 }
 0x3c6   :  { %v744_v54 = vmax.f32 %v739_v51, 0.0 }
 0x3c7   :  { %v741_v55 = vpop.f32.mrf.mxu1 }
 0x3c8   :  { %v745_v57 = vpack.c.bf16 %v744_v54, %v744_v54 }
 0x3c9   :  { %v1407_v59 = vpop.f32.mrf.mxu1 }
 0x3ca   :  { %1425 = vmatmul.mubr.bf16.vlgmr.msra.gmra.mxu0 %v745_v57 }
 0x3cb   :  { %1126 = vmatpush1.bf16.msra.mxu0 %v1516_v56  ;;  %1157 = vmatprep.mubr.bf16.mxu0 %v1832_v53  ;;  %v1552_v53 = vld [vmem:[#allocation16 + $0x10] ss:$8 sps:$4 sm:$0xff]  }
 0x3cc   :  { %1127 = vmatprep.subr.bf16.mxu0 %v1524_v58 }
 0x3cf   :  { %1128 = vmatpush1.bf16.msra.mxu0 %v1522_v60 }
 0x3d0   :  { %1129 = vmatprep.subr.bf16.mxu0 %v1530_v61 }
 0x3d3   :  { %1130 = vmatpush1.bf16.msra.mxu0 %v1528_v62 }
 0x3d4   :  { %1131 = vmatprep.subr.bf16.mxu0 %v1536_v63 }
 0x3d7   :  { %1132 = vmatpush1.bf16.msra.mxu0 %v1534_v1 }
 0x3d8   :  { %1133 = vmatprep.subr.bf16.mxu0 %v1542_v2 }
 0x3db   :  { %1134 = vmatpush1.bf16.msra.mxu0 %v1540_v3 }
 0x3dc   :  { %1135 = vmatprep.subr.bf16.mxu0 %v1548_v4 }
 0x3df   :  { %1136 = vmatpush1.bf16.msra.mxu0 %v1546_v5 }
 0x3e0   :  { %1137 = vmatprep.subr.bf16.mxu0 %v1554_v6 }
 0x3e3   :  { %1138 = vmatpush1.bf16.msra.mxu0 %v1552_v53 }
 0x3e4   :  { %1139 = vmatprep.subr.bf16.mxu0 %v1560_v8 }
 0x3e7   :  { %1140 = vmatpush1.bf16.msra.mxu0 %v1558_v10 }
 0x48a   :  { %v851_v12 = vpop.f32.mrf.mxu0 }
 0x48b   :  { %v852_v13 = vadd.f32 %v1274_v11, %v851_v12 }
 0x48c   :  { %v1426_v14 = vpop.f32.mrf.mxu0 }
 0x48d   :  { %v857_v16 = vmax.f32 %v852_v13, 0.0 }
 0x48e   :  { %v854_v18 = vpop.f32.mrf.mxu0 }
 0x48f   :  { %v858_v19 = vpack.c.bf16 %v857_v16, %v857_v16 }
 0x490   :  { %v1427_v20 = vpop.f32.mrf.mxu0 }
 0x491   :  { %1000 = vmatmul.mubr.bf16.vlgmr.msra.gmra.mxu1 %v858_v19  ;;  %1158 = vmatmul.mubr.bf16.vlgmr.msra.gmra.mxu0 %v858_v19 }
 0x492   :  { %1754 = shalt.err (!%p1751_p7)
}
 0x493   :  { %1184 = dma.vmem_to_hbm [thread:$0]  %s1182_s2, 256, %s2068_s16, [#allocation4]   ;;  %v875_v21 = vld [vmem:[%s2065_s13] sm:$0x3] }
 0x494   :  { %v1033_v22 = vld [vmem:[%s2067_s15] sm:$0x3]  ;;  %v880_v23 = vrot.slane %v875_v21, %v2015_v15  ;;  %v884_v25 = vrot.slane %v875_v21, %v2020_v17  ;;  %s1834_s16 = smov [#allocation18]   ;;  %s1835_s13 = smov [#allocation20]  }
 0x495   :  { %v1038_v24 = vrot.slane %v1033_v22, %v2015_v15  ;;  %v1042_v26 = vrot.slane %v1033_v22, %v2020_v17  ;;  %s1191_s28 = sshll.u32 %s1834_s16, 4  ;;  %s1201_s15 = sshll.u32 %s1835_s13, 4  ;;  %s1192_s28 = int_to_ptr.vmem [resolvable:$true] %s1191_s28  ;;  %s1202_s15 = int_to_ptr.vmem [resolvable:$true] %s1201_s15 }
 0x496   :  { %s1763_s29 = scalar_lea.vmem %s1192_s28, 128  ;;  %p1768_p9 = scmp.lt.s32.totalorder %s1192_s28, %s1192_s28 }
 0x497   :  { %p1764_p8 = scmp.ne.s32.totalorder %s1192_s28, %s1763_s29  ;;  %p1769_p10 = scmp.lt.s32.totalorder %s1763_s29, %s1763_s29 }
 0x499   :  { %p1770_p11 = por %p1769_p10, %p1768_p9 }
 0x49b   :  { %p1771_p12 = pnand %p1770_p11, %p1764_p8 }
 0x551   :  { %v1001_v27 = vpop.f32.mrf.mxu1  ;;  %v1159_v28 = vpop.f32.mrf.mxu0 }
 0x552   :  { %v1002_v31 = vadd.f32 %v1001_v27, %v880_v23  ;;  %v1160_v32 = vadd.f32 %v1159_v28, %v1038_v24 }
 0x553   :  { %v1003_v29 = vpop.f32.mrf.mxu1  ;;  %v1161_v30 = vpop.f32.mrf.mxu0 }
 0x554   :  { %v1004_v33 = vadd.f32 %v1003_v29, %v884_v25  ;;  %v1162_v34 = vadd.f32 %v1161_v30, %v1042_v26 }
 0x555   :  { %v1005_v35 = vpop.f32.mrf.mxu1  ;;  %v1163_v36 = vpop.f32.mrf.mxu0 }
 0x556   :  { %v1317_v37 = vpack.c.bf16 %v1004_v33, %v1002_v31  ;;  %v1318_v15 = vpack.c.bf16 %v1162_v34, %v1160_v32 }
 0x557   :  { %v1006_v38 = vpop.f32.mrf.mxu1  ;;  %v1164_v39 = vpop.f32.mrf.mxu0 }
 0x558   :  { %1016 = vst [vmem:[#allocation18] sm:$0xff] %v1317_v37  ;;  %1174 = vst [vmem:[#allocation20] sm:$0xff] %v1318_v15 }
 0x559   :  { %1774 = shalt.err (!%p1771_p12)
}
 0x55a   :  { %1194 = dma.vmem_to_hbm [thread:$0]  %s1192_s28, 128, %s2069_s17, [#allocation19]  }
 0x55b   :  { %s1783_s6 = scalar_lea.vmem %s1202_s15, 128  ;;  %p1788_p0 = scmp.lt.s32.totalorder %s1202_s15, %s1202_s15 }
 0x55c   :  { %p1784_p13 = scmp.ne.s32.totalorder %s1202_s15, %s1783_s6  ;;  %p1789_p1 = scmp.lt.s32.totalorder %s1783_s6, %s1783_s6 }
 0x55e   :  { %p1790_p2 = por %p1789_p1, %p1788_p0 }
 0x560   :  { %p1791_p3 = pnand %p1790_p2, %p1784_p13 }
 0x562   :  { %1794 = shalt.err (!%p1791_p3)
}
 0x563   :  { %1204 = dma.vmem_to_hbm [thread:$0]  %s1202_s15, 128, %s2070_s18, [#allocation19]  }
 0x564   :  { %1813 = dma.done.wait [#allocation4], 256  }
 0x565   :  { %1814 = vsyncadd [#allocation4], 4294967040 }
 0x566   :  { %1815 = dma.done.wait [#allocation19], 256  }
 0x567   :  { %1816 = vsyncadd [#allocation19], 4294967040 }
 0x568   :  { %1214 = vsyncpa [#allocation3], 1 }
 0x569   :  { %1215 = vsyncpa [#allocation6], 1 }
 0x56a   :  { %1216 = vsyncpa [#allocation9], 1 }
 0x56b   :  { %1217 = vsyncpa [#allocation12], 1 }
 0x56c   :  { %1218 = vsyncpa [#allocation15], 1 }
 0x56d   :  { %1219 = vsyncpa [#allocation4], 1 }
 0x56e   :  { %1220 = vsyncpa [#allocation19], 1 }

</bundles_post_ra>
